<compile_context>
chip_gen: v7x
topology: tpu7x:2x2x1
jax: 0.10.0
libtpu: 0.0.40
codegen_flags: <defaults>
</compile_context>

<pallas_src>
import functools

import jax
import jax.numpy as jnp
from jax.experimental import pallas as pl
from jax.experimental.pallas import tpu as pltpu


_LANES = 128   # vreg lane width (last-dim tiling unit)


def _round_up(x, m):
    return (x + m - 1) // m * m


def _sublanes_for(dtype):
    # Second-to-last-dim tiling unit: 8 for 4-byte, 16 for 2-byte, 32 for 1-byte.
    return max(8, 32 // jnp.dtype(dtype).itemsize)


def _device_info():
    """(vmem_capacity_bytes, tensorcores_per_chip) with conservative fallbacks."""
    vmem_cap = 64 * 1024 * 1024            # conservative default (v7x per-TC VMEM)
    try:
        info = pltpu.get_tpu_info()
        cap = int(getattr(info, "vmem_capacity_bytes", 0))
        if cap > 0:
            vmem_cap = cap
    except Exception:
        pass
    n_cores = 1
    try:
        kind = jax.devices()[0].device_kind.lower()
        if "7" in kind:                    # TPU7x / v7x: 2 TensorCores per chip
            n_cores = 2
    except Exception:
        pass
    return vmem_cap, n_cores


def _gelu_f32(x, approximate):
    if approximate:
        # tanh approximation -> EUP slot (nearly free), numerics differ slightly
        # from nn.GELU() default, so it is opt-in.
        c = 0.7978845608028654             # sqrt(2/pi)
        return 0.5 * x * (1.0 + jnp.tanh(c * (x + 0.044715 * x * x * x)))
    # nn.GELU() default: 0.5 * x * (1 + erf(x / sqrt(2))), evaluated in f32.
    return 0.5 * x * (1.0 + jax.lax.erf(x * 0.7071067811865476))


# ----------------------------- kernels --------------------------------------


def _resident_kernel(h_ref, w_ref, b_ref, o_ref, *, num_layers, approximate):
    """One batch tile; full (L, Hp, Hp) weight stack resident in VMEM."""
    io_dtype = w_ref.dtype                 # MXU input dtype (f32 or bf16)
    x = h_ref[...].astype(io_dtype)
    for l in range(num_layers):            # static unroll; num_layers is small
        y = jnp.dot(x, w_ref[l], preferred_element_type=jnp.float32)
        y = y + b_ref[l].astype(jnp.float32)          # (1, Hp) lane broadcast
        x = _gelu_f32(y, approximate).astype(io_dtype)
        # TODO(synk): Dropout(p) is identity in inference mode; training-mode
        # stochastic masking (pltpu.prng_random_bits) intentionally omitted.
    o_ref[...] = x.astype(o_ref.dtype)


def _layer_tiled_kernel(h_ref, w_ref, b_ref, o_ref, act_ref, *,
                        num_layers, approximate):
    """grid=(batch_tiles, L): per-layer weights streamed, activation carried in scratch."""
    l = pl.program_id(1)
    io_dtype = w_ref.dtype

    @pl.when(l == 0)
    def _():
        act_ref[...] = h_ref[...].astype(jnp.float32)

    x = act_ref[...].astype(io_dtype)
    y = jnp.dot(x, w_ref[0], preferred_element_type=jnp.float32)
    y = y + b_ref[0].astype(jnp.float32)              # (1, Hp) lane broadcast
    act_ref[...] = _gelu_f32(y, approximate)

    @pl.when(l == num_layers - 1)
    def _():
        o_ref[...] = act_ref[...].astype(o_ref.dtype)


# ----------------------------- planning -------------------------------------


def _plan(batch, Hp, num_layers, h_dtype, w_dtype, o_dtype, force_layer_tiled):
    h_b = jnp.dtype(h_dtype).itemsize
    w_b = jnp.dtype(w_dtype).itemsize
    o_b = jnp.dtype(o_dtype).itemsize
    sub = max(_sublanes_for(h_dtype), _sublanes_for(o_dtype))
    Bp0 = _round_up(max(batch, sub), sub)

    vmem_cap, n_cores = _device_info()
    budget = int(vmem_cap * 0.8)           # headroom for compiler temps

    resident_w = num_layers * (Hp * Hp + Hp) * w_b
    layer_tiled = bool(force_layer_tiled) or resident_w > int(budget * 0.6)

    if layer_tiled:
        w_vmem = 2 * (Hp * Hp + Hp) * w_b              # double-buffered per-layer block
        per_row = Hp * (2 * h_b + 2 * o_b + 4 + 8)     # in/out bufs + f32 scratch + temps
    else:
        w_vmem = resident_w                            # resident, single-buffered
        per_row = Hp * (2 * h_b + 2 * o_b + 8)         # in/out bufs + f32 temps

    avail = budget - w_vmem
    max_rows = sub
    if avail > 0:
        max_rows = max(sub, min(2048, (avail // per_row) // sub * sub))

    # Batch-tile choice.
    split_for_cores = n_cores >= 2 and (
        (Bp0 // 2) * Hp * Hp * num_layers >= 100_000_000   # per-TC work >> per-step overhead
        or Bp0 > max_rows)
    if split_for_cores:
        ntiles = 2                                     # EVEN tile count -> balanced TCs
        while _round_up(pl.cdiv(Bp0, ntiles), sub) > max_rows:
            ntiles += 2
        bt = _round_up(pl.cdiv(Bp0, ntiles), sub)
    else:
        bt = min(Bp0, max_rows)
        ntiles = pl.cdiv(Bp0, bt)
        bt = _round_up(pl.cdiv(Bp0, ntiles), sub)
    Bp = ntiles * bt

    # VMEM limit derived from actual buffer sizes (not a hard-coded constant).
    n_in_buf = 1 if (ntiles == 1 and not layer_tiled) else 2
    need = (w_vmem
            + n_in_buf * bt * Hp * h_b
            + 2 * bt * Hp * o_b
            + (bt * Hp * 4 if layer_tiled else 0)
            + 3 * bt * Hp * 4                          # f32 temporaries in the body
            + (4 << 20))                               # compiler scratch headroom
    vmem_limit = int(min(max(need, 32 << 20), max(budget, need)))

    return dict(Bp=Bp, bt=bt, ntiles=ntiles, layer_tiled=layer_tiled,
                vmem_limit=vmem_limit)


# ----------------------------- wrapper ---------------------------------------


@functools.partial(jax.jit, static_argnames=("approximate_gelu", "force_layer_tiled"))
def ode_func_forward(t, h, w_stack, b_stack, approximate_gelu=False,
                     force_layer_tiled=False):
    """Pallas implementation of ODEFunc.forward(t, h). `t` is ignored."""
    del t
    B, H = h.shape
    if b_stack.ndim == 2:
        b_stack = b_stack[:, None, :]
    L, Hw, _ = w_stack.shape

    # Lane-dense hidden dim.  Prefer parameters pre-padded via pad_params()
    # (once, outside the ODE-solver hot loop); pad here only as a fallback.
    Hp = _round_up(max(H, Hw), _LANES)
    if Hw != Hp:
        w_stack = jnp.pad(w_stack, ((0, 0), (0, Hp - Hw), (0, Hp - Hw)))
        b_stack = jnp.pad(b_stack, ((0, 0), (0, 0), (0, Hp - b_stack.shape[-1])))

    plan = _plan(B, Hp, L, h.dtype, w_stack.dtype, h.dtype, force_layer_tiled)
    Bp, bt, ntiles = plan["Bp"], plan["bt"], plan["ntiles"]

    h_p = jnp.pad(h, ((0, Bp - B), (0, Hp - H)))

    if plan["layer_tiled"]:
        kernel = functools.partial(_layer_tiled_kernel, num_layers=L,
                                   approximate=approximate_gelu)
        grid = (ntiles, L)
        in_specs = [
            pl.BlockSpec((bt, Hp), lambda i, l: (i, 0)),
            pl.BlockSpec((1, Hp, Hp), lambda i, l: (l, 0, 0)),
            pl.BlockSpec((1, 1, Hp), lambda i, l: (l, 0, 0)),
        ]
        out_specs = pl.BlockSpec((bt, Hp), lambda i, l: (i, 0))
        scratch_shapes = [pltpu.VMEM((bt, Hp), jnp.float32)]
        dims = ("parallel", "arbitrary")
    else:
        kernel = functools.partial(_resident_kernel, num_layers=L,
                                   approximate=approximate_gelu)
        grid = (ntiles,)
        if ntiles == 1:
            # Single grid step: nothing to pipeline -> single-buffer the
            # activation input (saves bt*Hp*itemsize of VMEM, matters on v7x).
            h_spec = pl.BlockSpec((bt, Hp), lambda i: (i, 0),
                                  pipeline_mode=pl.Buffered(1))
        else:
            h_spec = pl.BlockSpec((bt, Hp), lambda i: (i, 0))
        in_specs = [
            h_spec,
            # Weight/bias stacks: constant index_map -> resident, single-buffered.
            pl.BlockSpec((L, Hp, Hp), lambda i: (0, 0, 0),
                         pipeline_mode=pl.Buffered(1)),
            pl.BlockSpec((L, 1, Hp), lambda i: (0, 0, 0),
                         pipeline_mode=pl.Buffered(1)),
        ]
        # Output left at default buffering so the writeback DMA stays overlapped.
        out_specs = pl.BlockSpec((bt, Hp), lambda i: (i, 0))
        scratch_shapes = []
        dims = ("parallel",)

    out = pl.pallas_call(
        kernel,
        out_shape=jax.ShapeDtypeStruct((Bp, Hp), h.dtype),
        grid_spec=pltpu.PrefetchScalarGridSpec(
            num_scalar_prefetch=0,
            grid=grid,
            in_specs=in_specs,
            out_specs=out_specs,
            scratch_shapes=scratch_shapes,
        ),
        compiler_params=pltpu.CompilerParams(
            dimension_semantics=dims,
            vmem_limit_bytes=plan["vmem_limit"],
        ),
    )(h_p, w_stack, b_stack)

    return out[:B, :H]


# ----------------------------- params / reference ---------------------------


def init_params(key, hidden_dim, num_layers, dtype=jnp.float32):
    """nn.Linear-style U(-1/sqrt(H), 1/sqrt(H)) init.  dtype=jnp.bfloat16 is
    recommended for large models (halves resident-weight VMEM, bf16 MXU rate)."""
    bound = 1.0 / (hidden_dim ** 0.5)
    kw, kb = jax.random.split(key)
    w = jax.random.uniform(kw, (num_layers, hidden_dim, hidden_dim),
                           minval=-bound, maxval=bound,
                           dtype=jnp.float32).astype(dtype)
    b = jax.random.uniform(kb, (num_layers, 1, hidden_dim),
                           minval=-bound, maxval=bound,
                           dtype=jnp.float32).astype(dtype)
    return w, b


def pad_params(w_stack, b_stack):
    """Zero-pad the hidden dim to a 128-lane multiple ONCE (outside the solver loop)."""
    if b_stack.ndim == 2:
        b_stack = b_stack[:, None, :]
    L, H, _ = w_stack.shape
    Hp = _round_up(H, _LANES)
    w_p = jnp.pad(w_stack, ((0, 0), (0, Hp - H), (0, Hp - H)))
    b_p = jnp.pad(b_stack, ((0, 0), (0, 0), (0, Hp - H)))
    return w_p, b_p


def ode_func_ref(h, w_stack, b_stack):
    """Pure-JAX reference for correctness checking."""
    x = h.astype(jnp.float32)
    for l in range(w_stack.shape[0]):
        x = x @ w_stack[l].astype(jnp.float32) + b_stack[l].astype(jnp.float32)
        x = jax.nn.gelu(x, approximate=False)
    return x.astype(h.dtype)


if __name__ == "__main__":
    batch, hidden_dim, num_layers = 16, 32, 3
    key = jax.random.PRNGKey(0)
    k_h, k_p, k_h2 = jax.random.split(key, 3)

    t = jnp.zeros((), jnp.float32)                    # forward ignores t
    w_raw, b_raw = init_params(k_p, hidden_dim, num_layers, dtype=jnp.float32)
    w_p, b_p = pad_params(w_raw, b_raw)               # pad once, not per solver step

    # Main path: resident weight stack, single lane-dense batch tile.
    h = jax.random.normal(k_h, (batch, hidden_dim), dtype=jnp.float32)
    out = jax.block_until_ready(ode_func_forward(t, h, w_p, b_p))
    ref = ode_func_ref(h, w_raw, b_raw)
    assert out.shape == (batch, hidden_dim)
    assert jnp.allclose(out, ref, atol=1e-5, rtol=1e-5), "resident path mismatch"

    # Layer-tiled fallback (used automatically when L*Hp*Hp weights exceed the
    # VMEM budget, e.g. large Hp on v7x) exercised here at small shapes.
    h2 = jax.random.normal(k_h2, (24, hidden_dim), dtype=jnp.float32)
    out2 = jax.block_until_ready(
        ode_func_forward(t, h2, w_p, b_p, force_layer_tiled=True))
    ref2 = ode_func_ref(h2, w_raw, b_raw)
    assert out2.shape == (24, hidden_dim)
    assert jnp.allclose(out2, ref2, atol=1e-5, rtol=1e-5), "layer-tiled path mismatch"

    print("KERNEL_OK")
</pallas_src>

<mosaic_0001>
module attributes {stable_mosaic.version = 11 : i64} {
  func.func @_resident_kernel(%arg0: i32, %arg1: memref<16x128xf32, #tpu.memory_space<vmem>>, %arg2: memref<3x128x128xf32, #tpu.memory_space<vmem>>, %arg3: memref<3x1x128xf32, #tpu.memory_space<vmem>>, %arg4: memref<16x128xf32, #tpu.memory_space<vmem>>) attributes {dimension_semantics = [#tpu.dimension_semantics<parallel>], iteration_bounds = array<i64: 1>, scalar_prefetch = 0 : i64, scratch_operands = 0 : i64, tpu.core_type = #tpu.core_type<tc>, window_params = [{pipeline_mode = #tpu.pipeline_mode<synchronous>, transform_indices = @transform_0, window_bounds = array<i64: 16, 128>}, {pipeline_mode = #tpu.pipeline_mode<synchronous>, transform_indices = @transform_1, window_bounds = array<i64: 3, 128, 128>}, {pipeline_mode = #tpu.pipeline_mode<synchronous>, transform_indices = @transform_2, window_bounds = array<i64: 3, 1, 128>}, {transform_indices = @transform_3, window_bounds = array<i64: 16, 128>}]} {
    %c0 = arith.constant 0 : index
    %c0_0 = arith.constant 0 : index
    %0 = vector.load %arg1[%c0, %c0_0] : memref<16x128xf32, #tpu.memory_space<vmem>>, vector<16x128xf32>
    %c0_1 = arith.constant 0 : index
    %c0_2 = arith.constant 0 : index
    %c0_3 = arith.constant 0 : index
    %1 = vector.load %arg2[%c0_1, %c0_2, %c0_3] : memref<3x128x128xf32, #tpu.memory_space<vmem>>, vector<1x128x128xf32>
    %2 = vector.shape_cast %1 : vector<1x128x128xf32> to vector<128x128xf32>
    %cst = arith.constant dense<0.000000e+00> : vector<16x128xf32>
    %3 = tpu.matmul %0, %2, %cst {dimension_numbers = #tpu.dot_dimension_numbers<[1], [0], [0], [1], [0, 0, 1, 1], [], []>} : vector<16x128xf32>, vector<128x128xf32>, vector<16x128xf32> -> vector<16x128xf32>
    %c0_4 = arith.constant 0 : index
    %c0_5 = arith.constant 0 : index
    %c0_6 = arith.constant 0 : index
    %4 = vector.load %arg3[%c0_4, %c0_5, %c0_6] : memref<3x1x128xf32, #tpu.memory_space<vmem>>, vector<1x1x128xf32>
    %5 = vector.shape_cast %4 : vector<1x1x128xf32> to vector<1x128xf32>
    %6 = vector.broadcast %5 : vector<1x128xf32> to vector<16x128xf32>
    %7 = arith.addf %3, %6 : vector<16x128xf32>
    %cst_7 = arith.constant 5.000000e-01 : f32
    %8 = vector.broadcast %cst_7 : f32 to vector<16x128xf32>
    %9 = arith.mulf %8, %7 : vector<16x128xf32>
    %cst_8 = arith.constant 0.707106769 : f32
    %10 = vector.broadcast %cst_8 : f32 to vector<16x128xf32>
    %11 = arith.mulf %7, %10 : vector<16x128xf32>
    %12 = math.erf %11 : vector<16x128xf32>
    %cst_9 = arith.constant 1.000000e+00 : f32
    %13 = vector.broadcast %cst_9 : f32 to vector<16x128xf32>
    %14 = arith.addf %13, %12 : vector<16x128xf32>
    %15 = arith.mulf %9, %14 : vector<16x128xf32>
    %c1 = arith.constant 1 : index
    %c0_10 = arith.constant 0 : index
    %c0_11 = arith.constant 0 : index
    %16 = vector.load %arg2[%c1, %c0_10, %c0_11] : memref<3x128x128xf32, #tpu.memory_space<vmem>>, vector<1x128x128xf32>
    %17 = vector.shape_cast %16 : vector<1x128x128xf32> to vector<128x128xf32>
    %cst_12 = arith.constant dense<0.000000e+00> : vector<16x128xf32>
    %18 = tpu.matmul %15, %17, %cst_12 {dimension_numbers = #tpu.dot_dimension_numbers<[1], [0], [0], [1], [0, 0, 1, 1], [], []>} : vector<16x128xf32>, vector<128x128xf32>, vector<16x128xf32> -> vector<16x128xf32>
    %c1_13 = arith.constant 1 : index
    %c0_14 = arith.constant 0 : index
    %c0_15 = arith.constant 0 : index
    %19 = vector.load %arg3[%c1_13, %c0_14, %c0_15] : memref<3x1x128xf32, #tpu.memory_space<vmem>>, vector<1x1x128xf32>
    %20 = vector.shape_cast %19 : vector<1x1x128xf32> to vector<1x128xf32>
    %21 = vector.broadcast %20 : vector<1x128xf32> to vector<16x128xf32>
    %22 = arith.addf %18, %21 : vector<16x128xf32>
    %cst_16 = arith.constant 5.000000e-01 : f32
    %23 = vector.broadcast %cst_16 : f32 to vector<16x128xf32>
    %24 = arith.mulf %23, %22 : vector<16x128xf32>
    %cst_17 = arith.constant 0.707106769 : f32
    %25 = vector.broadcast %cst_17 : f32 to vector<16x128xf32>
    %26 = arith.mulf %22, %25 : vector<16x128xf32>
    %27 = math.erf %26 : vector<16x128xf32>
    %cst_18 = arith.constant 1.000000e+00 : f32
    %28 = vector.broadcast %cst_18 : f32 to vector<16x128xf32>
    %29 = arith.addf %28, %27 : vector<16x128xf32>
    %30 = arith.mulf %24, %29 : vector<16x128xf32>
    %c2 = arith.constant 2 : index
    %c0_19 = arith.constant 0 : index
    %c0_20 = arith.constant 0 : index
    %31 = vector.load %arg2[%c2, %c0_19, %c0_20] : memref<3x128x128xf32, #tpu.memory_space<vmem>>, vector<1x128x128xf32>
    %32 = vector.shape_cast %31 : vector<1x128x128xf32> to vector<128x128xf32>
    %cst_21 = arith.constant dense<0.000000e+00> : vector<16x128xf32>
    %33 = tpu.matmul %30, %32, %cst_21 {dimension_numbers = #tpu.dot_dimension_numbers<[1], [0], [0], [1], [0, 0, 1, 1], [], []>} : vector<16x128xf32>, vector<128x128xf32>, vector<16x128xf32> -> vector<16x128xf32>
    %c2_22 = arith.constant 2 : index
    %c0_23 = arith.constant 0 : index
    %c0_24 = arith.constant 0 : index
    %34 = vector.load %arg3[%c2_22, %c0_23, %c0_24] : memref<3x1x128xf32, #tpu.memory_space<vmem>>, vector<1x1x128xf32>
    %35 = vector.shape_cast %34 : vector<1x1x128xf32> to vector<1x128xf32>
    %36 = vector.broadcast %35 : vector<1x128xf32> to vector<16x128xf32>
    %37 = arith.addf %33, %36 : vector<16x128xf32>
    %cst_25 = arith.constant 5.000000e-01 : f32
    %38 = vector.broadcast %cst_25 : f32 to vector<16x128xf32>
    %39 = arith.mulf %38, %37 : vector<16x128xf32>
    %cst_26 = arith.constant 0.707106769 : f32
    %40 = vector.broadcast %cst_26 : f32 to vector<16x128xf32>
    %41 = arith.mulf %37, %40 : vector<16x128xf32>
    %42 = math.erf %41 : vector<16x128xf32>
    %cst_27 = arith.constant 1.000000e+00 : f32
    %43 = vector.broadcast %cst_27 : f32 to vector<16x128xf32>
    %44 = arith.addf %43, %42 : vector<16x128xf32>
    %45 = arith.mulf %39, %44 : vector<16x128xf32>
    %c0_28 = arith.constant 0 : index
    %c0_29 = arith.constant 0 : index
    %46 = vector.load %arg4[%c0_28, %c0_29] : memref<16x128xf32, #tpu.memory_space<vmem>>, vector<16x128xf32>
    tpu.vector_store %arg4[%c0_28, %c0_29], %45 {strides = array<i32>} : memref<16x128xf32, #tpu.memory_space<vmem>>, vector<16x128xf32>,
    return
  }
  func.func @transform_0(%arg0: i32) -> (i32, i32) {
    %c0_i32 = arith.constant 0 : i32
    %c0_i32_0 = arith.constant 0 : i32
    return %arg0, %c0_i32 : i32, i32
  }
  func.func @transform_1(%arg0: i32) -> (i32, i32, i32) {
    %c0_i32 = arith.constant 0 : i32
    %c0_i32_0 = arith.constant 0 : i32
    %c0_i32_1 = arith.constant 0 : i32
    %c0_i32_2 = arith.constant 0 : i32
    return %c0_i32, %c0_i32_0, %c0_i32_1 : i32, i32, i32
  }
  func.func @transform_2(%arg0: i32) -> (i32, i32, i32) {
    %c0_i32 = arith.constant 0 : i32
    %c0_i32_0 = arith.constant 0 : i32
    %c0_i32_1 = arith.constant 0 : i32
    %c0_i32_2 = arith.constant 0 : i32
    return %c0_i32, %c0_i32_0, %c0_i32_1 : i32, i32, i32
  }
  func.func @transform_3(%arg0: i32) -> (i32, i32) {
    %c0_i32 = arith.constant 0 : i32
    %c0_i32_0 = arith.constant 0 : i32
    return %arg0, %c0_i32 : i32, i32
  }
}

</mosaic_0001>

<bundles_post_ra>
// kernel: ode_func_forward.1
= control target key start
LH: loop header
LB: loop body
LE: loop exit
PB: predicated region body
PF: predicated region fallthrough
CT: control target
= control target key end

     0   :  { %8 = vsyncpa [#allocation3], 0  ;;  %s771_s0 = inlined_call_operand.vmem [shape: f32[16,128], index: 0, kind: input, shape index: {}]   ;;  %s772_s1 = inlined_call_operand.hbm [shape: f32[3,128,128], index: 1, kind: input, shape index: {}]   ;;  %s773_s2 = inlined_call_operand.vmem [shape: f32[3,1,128], index: 2, kind: input, shape index: {}]   ;;  %s774_s3 = inlined_call_operand.hbm [shape: f32[16,128], index: 3, kind: output, shape index: {}]  }
   0x1   :  { %9 = vsyncpa [#allocation4], 0  ;;  %s702_s12 = smov [#allocation2]   ;;  %s654_s16 = scalar_lea.hbm %s772_s1, 6144 }
   0x2   :  { %s17_s13 = sshll.u32 %s702_s12, 4  ;;  %p655_p0 = scmp.ne.s32.totalorder %s772_s1, %s654_s16  ;;  %s18_s13 = int_to_ptr.vmem [resolvable:$true] %s17_s13 }
   0x3   :  { %p658_p1 = scmp.lt.u32.totalorder %s654_s16, %s772_s1 }
   0x5   :  { %p660_p2 = pnand %p658_p1, %p655_p0 }
   0x7   :  { %663 = shalt.err (!%p660_p2)
}
   0x8   :  { %s664_s21 = scalar_lea.vmem %s18_s13, 6144  ;;  %p669_p4 = scmp.lt.s32.totalorder %s18_s13, %s18_s13 }
   0x9   :  { %p665_p3 = scmp.ne.s32.totalorder %s18_s13, %s664_s21  ;;  %p670_p5 = scmp.lt.s32.totalorder %s664_s21, %s664_s21 }
   0xb   :  { %p671_p6 = por %p670_p5, %p669_p4 }
   0xd   :  { %p672_p7 = pnand %p671_p6, %p665_p3 }
   0xf   :  { %675 = shalt.err (!%p672_p7)
}
  0x10   :  { %s703_s22 = smov 128   ;;  %s704_s23 = smov 8  }
  0x11   :  { %23 = dma.hbm_to_vmem [thread:$0]  %s772_s1, 6144, %s18_s13, [#allocation3], %s703_s22, %s703_s22, %s704_s23  }
  0x12   :  { %698 = dma.done.wait [#allocation3], 6144  }
  0x13   :  { %699 = vsyncadd [#allocation3], 4294961152  ;;  %v31_v0 = vld [vmem:[#allocation2] sm:$0xff]  ;;  %v32_v1 = vld [vmem:[#allocation2 + $0x8] sm:$0xff]  ;;  %s705_s7 = smov [#allocation5]  }
  0x14   :  { %v33_v2 = vld [vmem:[#allocation2 + $0x10] sm:$0xff]  ;;  %v542_v3 = vpack.c.bf16 %v32_v1, %v31_v0  ;;  %v34_v4 = vld [vmem:[#allocation2 + $0x18] sm:$0xff]  ;;  %v35_v6 = vld [vmem:[#allocation2 + $0x20] sm:$0xff]  ;;  %s366_s8 = sshll.u32 %s705_s7, 4  ;;  %s367_s8 = int_to_ptr.vmem [resolvable:$true] %s366_s8 }
  0x15   :  { %v546_v5 = vpack.c.bf16 %v34_v4, %v33_v2  ;;  %v36_v7 = vld [vmem:[#allocation2 + $0x28] sm:$0xff]  ;;  %v37_v9 = vld [vmem:[#allocation2 + $0x30] sm:$0xff]  ;;  %v38_v10 = vld [vmem:[#allocation2 + $0x38] sm:$0xff]  ;;  %p681_p9 = scmp.lt.s32.totalorder %s367_s8, %s367_s8 }
  0x16   :  { %543 = vmatprep.subr.bf16.mxu0 %v542_v3  ;;  %v550_v8 = vpack.c.bf16 %v36_v7, %v35_v6  ;;  %v29_v11 = vld [vmem:[%s771_s0] sm:$0xff]  ;;  %v140_v12 = vld [vmem:[#allocation2 + $0x80] sm:$0xff]  ;;  %v141_v13 = vld [vmem:[#allocation2 + $0x88] sm:$0xff]  ;;  %v554_v20 = vpack.c.bf16 %v38_v10, %v37_v9 }
  0x17   :  { %545 = vmatpush3.bf16.msra.mxu0 %v542_v3  ;;  %469 = vmatprep.mubr.f32.mxu0 %v29_v11  ;;  %v142_v14 = vld [vmem:[#allocation2 + $0x90] sm:$0xff]  ;;  %v574_v15 = vpack.c.bf16 %v141_v13, %v140_v12  ;;  %v143_v16 = vld [vmem:[#allocation2 + $0x98] sm:$0xff]  ;;  %v144_v18 = vld [vmem:[#allocation2 + $0xa0] sm:$0xff] }
  0x18   :  { %547 = vmatprep.subr.bf16.mxu0 %v546_v5  ;;  %v578_v17 = vpack.c.bf16 %v143_v16, %v142_v14  ;;  %v145_v19 = vld [vmem:[#allocation2 + $0xa8] sm:$0xff]  ;;  %v39_v21 = vld [vmem:[#allocation2 + $0x40] sm:$0xff]  ;;  %v41_v25 = vld [vmem:[#allocation2 + $0x50] sm:$0xff] }
  0x19   :  { %575 = vmatprep.subr.bf16.mxu1 %v574_v15  ;;  %v40_v22 = vld [vmem:[#allocation2 + $0x48] sm:$0xff]  ;;  %v582_v23 = vpack.c.bf16 %v145_v19, %v144_v18  ;;  %v42_v26 = vld [vmem:[#allocation2 + $0x58] sm:$0xff]  ;;  %v43_v28 = vld [vmem:[#allocation2 + $0x60] sm:$0xff] }
  0x1a   :  { %577 = vmatpush3.bf16.msra.mxu1 %v574_v15  ;;  %v558_v24 = vpack.c.bf16 %v40_v22, %v39_v21  ;;  %v562_v27 = vpack.c.bf16 %v42_v26, %v41_v25  ;;  %v44_v29 = vld [vmem:[#allocation2 + $0x68] sm:$0xff]  ;;  %v45_v31 = vld [vmem:[#allocation2 + $0x70] sm:$0xff]  ;;  %v46_v32 = vld [vmem:[#allocation2 + $0x78] sm:$0xff] }
  0x1b   :  { %549 = vmatpush3.bf16.msra.mxu0 %v546_v5  ;;  %579 = vmatprep.subr.bf16.mxu1 %v578_v17  ;;  %v566_v30 = vpack.c.bf16 %v44_v29, %v43_v28  ;;  %v570_v33 = vpack.c.bf16 %v46_v32, %v45_v31  ;;  %v30_v34 = vld [vmem:[%s771_s0 + $0x8] sm:$0xff]  ;;  %v146_v35 = vld [vmem:[#allocation2 + $0xb0] sm:$0xff]  ;;  %v148_v38 = vld [vmem:[#allocation2 + $0xc0] sm:$0xff] }
  0x1c   :  { %551 = vmatprep.subr.bf16.mxu0 %v550_v8  ;;  %v147_v36 = vld [vmem:[#allocation2 + $0xb8] sm:$0xff]  ;;  %v149_v39 = vld [vmem:[#allocation2 + $0xc8] sm:$0xff]  ;;  %v150_v41 = vld [vmem:[#allocation2 + $0xd0] sm:$0xff] }
  0x1d   :  { %v586_v37 = vpack.c.bf16 %v147_v36, %v146_v35  ;;  %v590_v40 = vpack.c.bf16 %v149_v39, %v148_v38  ;;  %v151_v42 = vld [vmem:[#allocation2 + $0xd8] sm:$0xff]  ;;  %v152_v44 = vld [vmem:[#allocation2 + $0xe0] sm:$0xff]  ;;  %v153_v45 = vld [vmem:[#allocation2 + $0xe8] sm:$0xff] }
  0x1e   :  { %581 = vmatpush3.bf16.msra.mxu1 %v578_v17  ;;  %v594_v43 = vpack.c.bf16 %v151_v42, %v150_v41  ;;  %v598_v46 = vpack.c.bf16 %v153_v45, %v152_v44  ;;  %v154_v47 = vld [vmem:[#allocation2 + $0xf0] sm:$0xff]  ;;  %v155_v48 = vld [vmem:[#allocation2 + $0xf8] sm:$0xff]  ;;  %v250_v50 = vld [vmem:[#allocation2 + $0x100] sm:$0xff] }
  0x1f   :  { %553 = vmatpush3.bf16.msra.mxu0 %v550_v8  ;;  %583 = vmatprep.subr.bf16.mxu1 %v582_v23  ;;  %v602_v49 = vpack.c.bf16 %v155_v48, %v154_v47  ;;  %v251_v51 = vld [vmem:[#allocation2 + $0x108] sm:$0xff]  ;;  %v252_v52 = vld [vmem:[#allocation2 + $0x110] sm:$0xff]  ;;  %v253_v54 = vld [vmem:[#allocation2 + $0x118] sm:$0xff] }
  0x20   :  { %555 = vmatprep.subr.bf16.mxu0 %v554_v20  ;;  %v606_v53 = vpack.c.bf16 %v251_v51, %v250_v50  ;;  %v610_v55 = vpack.c.bf16 %v253_v54, %v252_v52  ;;  %v254_v56 = vld [vmem:[#allocation2 + $0x120] sm:$0xff]  ;;  %v255_v57 = vld [vmem:[#allocation2 + $0x128] sm:$0xff]  ;;  %v378_v59 = vld [vmem:[%s773_s2] ss:$0 sm:$0xff] }
  0x21   :  { %v614_v58 = vpack.c.bf16 %v255_v57, %v254_v56  ;;  %v256_v10 = vld [vmem:[#allocation2 + $0x130] sm:$0xff]  ;;  %v257_v11 = vld [vmem:[#allocation2 + $0x138] sm:$0xff]  ;;  %v258_v13 = vld [vmem:[#allocation2 + $0x140] sm:$0xff] }
  0x22   :  { %585 = vmatpush3.bf16.msra.mxu1 %v582_v23  ;;  %v618_v12 = vpack.c.bf16 %v257_v11, %v256_v10  ;;  %v259_v14 = vld [vmem:[#allocation2 + $0x148] sm:$0xff]  ;;  %v260_v16 = vld [vmem:[#allocation2 + $0x150] sm:$0xff]  ;;  %v261_v17 = vld [vmem:[#allocation2 + $0x158] sm:$0xff] }
  0x23   :  { %557 = vmatpush3.bf16.msra.mxu0 %v554_v20  ;;  %587 = vmatprep.subr.bf16.mxu1 %v586_v37  ;;  %v622_v15 = vpack.c.bf16 %v259_v14, %v258_v13  ;;  %v626_v18 = vpack.c.bf16 %v261_v17, %v260_v16  ;;  %v262_v19 = vld [vmem:[#allocation2 + $0x160] sm:$0xff]  ;;  %v263_v20 = vld [vmem:[#allocation2 + $0x168] sm:$0xff]  ;;  %v264_v22 = vld [vmem:[#allocation2 + $0x170] sm:$0xff] }
  0x24   :  { %559 = vmatprep.subr.bf16.mxu0 %v558_v24  ;;  %v630_v21 = vpack.c.bf16 %v263_v20, %v262_v19  ;;  %v265_v23 = vld [vmem:[#allocation2 + $0x178] sm:$0xff]  ;;  %v380_v25 = vld [vmem:[%s773_s2 + $0x1] ss:$0 sm:$0xff] }
  0x26   :  { %589 = vmatpush3.bf16.msra.mxu1 %v586_v37 }
  0x27   :  { %561 = vmatpush3.bf16.msra.mxu0 %v558_v24  ;;  %591 = vmatprep.subr.bf16.mxu1 %v590_v40  ;;  %v634_v24 = vpack.c.bf16 %v265_v23, %v264_v22 }
  0x28   :  { %563 = vmatprep.subr.bf16.mxu0 %v562_v27 }
  0x2a   :  { %593 = vmatpush3.bf16.msra.mxu1 %v590_v40  ;;  %v382_v40 = vld [vmem:[%s773_s2 + $0x2] ss:$0 sm:$0xff]  ;;  %s676_s2 = scalar_lea.vmem %s367_s8, 256 }
  0x2b   :  { %565 = vmatpush3.bf16.msra.mxu0 %v562_v27  ;;  %595 = vmatprep.subr.bf16.mxu1 %v594_v43  ;;  %p677_p8 = scmp.ne.s32.totalorder %s367_s8, %s676_s2  ;;  %p682_p10 = scmp.lt.s32.totalorder %s676_s2, %s676_s2 }
  0x2c   :  { %567 = vmatprep.subr.bf16.mxu0 %v566_v30 }
  0x2d   :  { %p683_p11 = por %p682_p10, %p681_p9 }
  0x2e   :  { %597 = vmatpush3.bf16.msra.mxu1 %v594_v43 }
  0x2f   :  { %569 = vmatpush3.bf16.msra.mxu0 %v566_v30  ;;  %599 = vmatprep.subr.bf16.mxu1 %v598_v46  ;;  %p684_p12 = pnand %p683_p11, %p677_p8 }
  0x30   :  { %571 = vmatprep.subr.bf16.mxu0 %v570_v33 }
  0x32   :  { %601 = vmatpush3.bf16.msra.mxu1 %v598_v46 }
  0x33   :  { %573 = vmatpush3.bf16.msra.mxu0 %v570_v33  ;;  %603 = vmatprep.subr.bf16.mxu1 %v602_v49 }
  0x34   :  { %607 = vmatprep.subr.bf16.mxu0 %v606_v53 }
  0x36   :  { %470 = vmatmul.mubr.f32.vlgmr.msra.gmra.mrb[0].mxu0 %v30_v34  ;;  %605 = vmatpush3.bf16.msra.mxu1 %v602_v49 }
  0x37   :  { %609 = vmatpush3.bf16.msra.mxu0 %v606_v53 }
  0x38   :  { %611 = vmatprep.subr.bf16.mxu0 %v610_v55 }
  0x3b   :  { %613 = vmatpush3.bf16.msra.mxu0 %v610_v55 }
  0x3c   :  { %615 = vmatprep.subr.bf16.mxu0 %v614_v58 }
  0x3f   :  { %617 = vmatpush3.bf16.msra.mxu0 %v614_v58 }
  0x40   :  { %619 = vmatprep.subr.bf16.mxu0 %v618_v12 }
  0x43   :  { %621 = vmatpush3.bf16.msra.mxu0 %v618_v12 }
  0x44   :  { %623 = vmatprep.subr.bf16.mxu0 %v622_v15 }
  0x47   :  { %625 = vmatpush3.bf16.msra.mxu0 %v622_v15 }
  0x48   :  { %627 = vmatprep.subr.bf16.mxu0 %v626_v18 }
  0x4b   :  { %629 = vmatpush3.bf16.msra.mxu0 %v626_v18 }
  0x4c   :  { %631 = vmatprep.subr.bf16.mxu0 %v630_v21 }
  0x4f   :  { %633 = vmatpush3.bf16.msra.mxu0 %v630_v21 }
  0x50   :  { %635 = vmatprep.subr.bf16.mxu0 %v634_v24 }
  0x53   :  { %637 = vmatpush3.bf16.msra.mxu0 %v634_v24 }
 0x109   :  { %v471_v60 = vpop.f32.mrb[0].mxu0 }
 0x10a   :  { %v126_v61 = vadd.f32 %v471_v60, %v378_v59  ;;  %v120_v62 = vpop.f32.mrb[1].mxu0 }
 0x10b   :  { %v121_v63 = vadd.f32 %v378_v59, %v120_v62 }
 0x10c   :  { %v132_v0 = vmul.f32 0.70710677, %v126_v61  ;;  %v130_v7 = vmul.f32 0.5, %v126_v61 }
 0x10d   :  { %v131_v1 = vmul.f32 0.70710677, %v121_v63  ;;  %v129_v5 = vmul.f32 0.5, %v121_v63 }
 0x10e   :  { %642 = verf.f32 %v132_v0 }
 0x10f   :  { %644 = verf.f32 %v131_v1 }
 0x118   :  { %v643_v2 = vpop.eup %642 }
 0x119   :  { %v645_v3 = vpop.eup %644  ;;  %v136_v4 = vadd.f32 1.0, %v643_v2 }
 0x11a   :  { %v135_v6 = vadd.f32 1.0, %v645_v3 }
 0x11b   :  { %v138_v9 = vmul.f32 %v136_v4, %v130_v7 }
 0x11c   :  { %v137_v8 = vmul.f32 %v135_v6, %v129_v5 }
 0x11e   :  { %504 = vmatprep.mubr.f32.mxu1 %v137_v8 }
 0x11f   :  { %505 = vmatmul.mubr.f32.vlgmr.msra.gmra.mrb[0].mxu1 %v138_v9 }
 0x1f2   :  { %v506_v26 = vpop.f32.mrb[0].mxu1 }
 0x1f3   :  { %v236_v27 = vadd.f32 %v506_v26, %v380_v25  ;;  %v230_v28 = vpop.f32.mrb[1].mxu1 }
 0x1f4   :  { %v231_v29 = vadd.f32 %v380_v25, %v230_v28 }
 0x1f5   :  { %v242_v30 = vmul.f32 0.70710677, %v236_v27  ;;  %v240_v37 = vmul.f32 0.5, %v236_v27 }
 0x1f6   :  { %v241_v31 = vmul.f32 0.70710677, %v231_v29  ;;  %v239_v35 = vmul.f32 0.5, %v231_v29 }
 0x1f7   :  { %646 = verf.f32 %v242_v30 }
 0x1f8   :  { %648 = verf.f32 %v241_v31 }
 0x201   :  { %v647_v32 = vpop.eup %646 }
 0x202   :  { %v649_v33 = vpop.eup %648  ;;  %v246_v34 = vadd.f32 1.0, %v647_v32 }
 0x203   :  { %v245_v36 = vadd.f32 1.0, %v649_v33 }
 0x204   :  { %v248_v39 = vmul.f32 %v246_v34, %v240_v37 }
 0x205   :  { %v247_v38 = vmul.f32 %v245_v36, %v239_v35 }
 0x207   :  { %539 = vmatprep.mubr.f32.mxu0 %v247_v38 }
 0x208   :  { %540 = vmatmul.mubr.f32.vlgmr.msra.gmra.mrb[2].mxu0 %v248_v39 }
 0x2db   :  { %v541_v41 = vpop.f32.mrb[2].mxu0 }
 0x2dc   :  { %v346_v42 = vadd.f32 %v541_v41, %v382_v40  ;;  %v340_v43 = vpop.f32.mrb[3].mxu0 }
 0x2dd   :  { %v341_v44 = vadd.f32 %v382_v40, %v340_v43 }
 0x2de   :  { %v352_v45 = vmul.f32 0.70710677, %v346_v42  ;;  %v350_v49 = vmul.f32 0.5, %v346_v42 }
 0x2df   :  { %v351_v46 = vmul.f32 0.70710677, %v341_v44  ;;  %v349_v51 = vmul.f32 0.5, %v341_v44 }
 0x2e0   :  { %650 = verf.f32 %v352_v45 }
 0x2e1   :  { %652 = verf.f32 %v351_v46 }
 0x2ea   :  { %v651_v47 = vpop.eup %650 }
 0x2eb   :  { %v653_v48 = vpop.eup %652  ;;  %v356_v50 = vadd.f32 1.0, %v651_v47 }
 0x2ec   :  { %v355_v52 = vadd.f32 1.0, %v653_v48 }
 0x2ed   :  { %v358_v53 = vmul.f32 %v356_v50, %v350_v49 }
 0x2ee   :  { %v357_v54 = vmul.f32 %v355_v52, %v349_v51 }
 0x2ef   :  { %360 = vst [vmem:[#allocation5 + $0x8] sm:$0xff] %v358_v53 }
 0x2f0   :  { %359 = vst [vmem:[#allocation5] sm:$0xff] %v357_v54 }
 0x2f1   :  { %687 = shalt.err (!%p684_p12)
}
 0x2f2   :  { %s688_s11 = scalar_lea.hbm %s774_s3, 256 }
 0x2f3   :  { %p689_p13 = scmp.ne.s32.totalorder %s774_s3, %s688_s11  ;;  %p692_p0 = scmp.lt.u32.totalorder %s688_s11, %s774_s3 }
 0x2f5   :  { %p694_p1 = pnand %p692_p0, %p689_p13 }
 0x2f7   :  { %697 = shalt.err (!%p694_p1)
}
 0x2f8   :  { %372 = dma.vmem_to_hbm [thread:$0]  %s367_s8, 256, %s774_s3, [#allocation4], %s703_s22, %s703_s22, %s704_s23  }
 0x2f9   :  { %700 = dma.done.wait [#allocation4], 256  }
 0x2fa   :  { %701 = vsyncadd [#allocation4], 4294967040 }
 0x2fb   :  { %376 = vsyncpa [#allocation3], 1 }
 0x2fc   :  { %377 = vsyncpa [#allocation4], 1 }

</bundles_post_ra>
